<compile_context>
chip_gen: v6e
topology: v6e:2x2x1
jax: 0.10.0
libtpu: 0.0.40
codegen_flags: <defaults>
</compile_context>

<pallas_src>
import jax
import jax.numpy as jnp
from jax.experimental import pallas as pl
from jax.experimental.pallas import tpu as pltpu


# ----------------------------------------------------------------------------
# Pallas kernel. Per (batch n, spatial tile s):
#   a   = relu(Wg @ g + Wx @ x + (bg + bx))           # folded conv+BN, MXU
#   psi = sigmoid(wpsi @ a + bpsi)                    # folded 1x1 conv -> 1 ch, MXU
#   out = x * psi                                     # broadcast over channels
# Accumulation is f32 even when HBM I/O is bf16 (bf16 feeds the MXU natively).
# ----------------------------------------------------------------------------
def attention_block_kernel(g_ref, x_ref, wg_ref, wx_ref, bc_ref, wpsi_ref,
                           bpsi_ref, out_ref):
    g = g_ref[...]                                    # (F_g, tl), io dtype
    x = x_ref[...]                                    # (F_l, tl), io dtype

    # Two MXU passes in the native io dtype (bf16 path uses the fast MXU path;
    # f32 accumulation via preferred_element_type). Op stays HBM-bound.
    a = (jnp.dot(wg_ref[...], g, preferred_element_type=jnp.float32)
         + jnp.dot(wx_ref[...], x, preferred_element_type=jnp.float32)
         + bc_ref[...])                               # (F_int, tl) f32
    a = jnp.maximum(a, 0.0)                           # ReLU

    # 1x1 conv F_int -> 1 as an MXU dot (frees VALU/XLU); psi bias is SMEM scalar.
    z = jnp.dot(wpsi_ref[...], a,
                preferred_element_type=jnp.float32) + bpsi_ref[0]   # (1, tl)
    # exp on the EUP; approx reciprocal also runs on the EUP (free slot).
    psi = pl.reciprocal(1.0 + jnp.exp(-z), approx=True)

    out_ref[...] = (x.astype(jnp.float32) * psi).astype(out_ref.dtype)  # (F_l, tl)


# ----------------------------------------------------------------------------
# VMEM budgeting / tile selection.
# ----------------------------------------------------------------------------
def _round_up(v, m):
    return -(-v // m) * m


def _vmem_budget():
    """(vmem_limit_bytes to request, byte budget for the tile picker)."""
    cap = 64 << 20                    # most constrained chip: v7x physical VMEM/TC
    try:
        info = pltpu.get_tpu_info()
        cap = int(getattr(info, "vmem_capacity_bytes", cap)) or cap
    except Exception:
        pass
    limit = min(cap - (16 << 20), 100 << 20)   # explicit scoped-VMEM request
    budget = limit - (8 << 20)                 # headroom for compiler temporaries
    return limit, budget


def _pick_spatial_tile(HW, F_g, F_l, F_int, io_bytes, budget_bytes, min_tiles=1):
    """Largest lane tile (multiple of 128) whose double-buffered g/x/out
    streams + (double-buffered) weight blocks + in-kernel f32 temporaries fit
    in budget_bytes. Accounts for sublane padding (8 rows f32 / 16 rows bf16)
    and lane padding to 128."""
    sub_io = 32 // io_bytes
    pad_io = lambda c: _round_up(max(c, 1), sub_io)
    pad_f32 = lambda c: _round_up(max(c, 1), 8)
    lane = lambda c: _round_up(max(c, 1), 128)

    # Bytes proportional to tl: double-buffered g/x/out streams + f32 temporaries
    # (MXU accumulator `a`, upcasts, x*psi product).
    per_lane = 2 * (pad_io(F_g) + 2 * pad_io(F_l)) * io_bytes
    per_lane += (pad_f32(F_g) + 2 * pad_f32(F_l) + pad_f32(F_int)) * 4

    # tl-independent bytes: weight/bias blocks. They are constant across the
    # grid but still double-buffered by default, so count 2 copies.
    # TODO(synk): pipeline_mode=pl.Buffered(1) on these specs would free one copy.
    fixed = 2 * (pad_io(F_int) * lane(F_g) * io_bytes        # Wg
                 + pad_io(F_int) * lane(F_l) * io_bytes      # Wx
                 + pad_f32(F_int) * 128 * 4                  # bc  (F_int, 1)
                 + 8 * lane(F_int) * 4)                      # wpsi (1, F_int)

    avail = max(budget_bytes - fixed, 128 * per_lane)
    tl = max(128, (avail // per_lane) // 128 * 128)
    tl = min(tl, _round_up(HW, 128))

    # Guarantee >= min_tiles spatial tiles (so v7x's 2nd TensorCore has work).
    if min_tiles > 1 and HW > 128:
        tl = min(tl, max(128, _round_up(-(-HW // min_tiles), 128)))

    # Prefer a tile that divides HW -> unmasked lane-dense stores, no padded DMA.
    if HW > tl and HW % 128 == 0:
        t = (tl // 128) * 128
        while t >= 128 and HW % t:
            t -= 128
        if t >= max(128, tl // 2):
            tl = t
    return tl


def attention_block_pallas(g3, x3, wg, wx, bc, wpsi, bpsi, out_dtype=None):
    """g3: (N, F_g, HW), x3: (N, F_l, HW). Returns (N, F_l, HW)."""
    N, F_g, HW = g3.shape
    _, F_l, _ = x3.shape
    F_int = wg.shape[0]
    out_dtype = out_dtype if out_dtype is not None else x3.dtype

    vmem_limit, budget = _vmem_budget()
    io_bytes = jnp.dtype(x3.dtype).itemsize
    min_tiles = 2 if N < 2 else 1
    tl = _pick_spatial_tile(HW, F_g, F_l, F_int, io_bytes, budget, min_tiles)
    grid = (N, pl.cdiv(HW, tl))

    row_spec = lambda c: pl.BlockSpec((None, c, tl), lambda n, s: (n, 0, s))
    const_spec = lambda r, c: pl.BlockSpec((r, c), lambda n, s: (0, 0))

    return pl.pallas_call(
        attention_block_kernel,
        out_shape=jax.ShapeDtypeStruct((N, F_l, HW), out_dtype),
        grid_spec=pltpu.PrefetchScalarGridSpec(
            num_scalar_prefetch=0,
            grid=grid,
            in_specs=[
                row_spec(F_g),                         # g tile    (F_g, tl)
                row_spec(F_l),                         # x tile    (F_l, tl)
                const_spec(F_int, F_g),                # Wg (folded, resident)
                const_spec(F_int, F_l),                # Wx (folded, resident)
                const_spec(F_int, 1),                  # bg + bx (folded, f32)
                const_spec(1, F_int),                  # psi weight row (f32)
                pl.BlockSpec(memory_space=pltpu.MemorySpace.SMEM),  # psi bias scalar
            ],
            out_specs=row_spec(F_l),
        ),
        compiler_params=pltpu.CompilerParams(
            # Both axes independent -> shardable across v7x's 2 TensorCores.
            dimension_semantics=("parallel", "parallel"),
            vmem_limit_bytes=int(vmem_limit)),
    )(g3, x3, wg, wx, bc, wpsi, bpsi)


# ----------------------------------------------------------------------------
# Plain-JAX glue: parameter init, BN folding, reshapes (no transposes, no casts
# of the big activation tensors — they are consumed in their producer dtype).
# ----------------------------------------------------------------------------
def fold_conv_bn(w, b, gamma, beta, mean, var, eps=1e-5):
    """w: (C_out, C_in) 1x1 conv weight. Returns (C_out, C_in) weight and
    (C_out,) bias with eval-mode BatchNorm folded in."""
    scale = gamma / jnp.sqrt(var + eps)
    return w * scale[:, None], (b - mean) * scale + beta


def init_params(key, F_g, F_l, F_int):
    ks = jax.random.split(key, 6)
    p = {}
    p["wg_conv"] = 0.1 * jax.random.normal(ks[0], (F_int, F_g), jnp.float32)
    p["bg_conv"] = 0.05 * jax.random.normal(ks[1], (F_int,), jnp.float32)
    p["wx_conv"] = 0.1 * jax.random.normal(ks[2], (F_int, F_l), jnp.float32)
    p["bx_conv"] = 0.05 * jax.random.normal(ks[3], (F_int,), jnp.float32)
    p["wp_conv"] = 0.1 * jax.random.normal(ks[4], (1, F_int), jnp.float32)
    p["bp_conv"] = 0.05 * jax.random.normal(ks[5], (1,), jnp.float32)

    def bn(n, seed):
        k = jax.random.PRNGKey(seed)
        k1, k2, k3, k4 = jax.random.split(k, 4)
        return dict(
            gamma=1.0 + 0.1 * jax.random.normal(k1, (n,), jnp.float32),
            beta=0.1 * jax.random.normal(k2, (n,), jnp.float32),
            mean=0.1 * jax.random.normal(k3, (n,), jnp.float32),
            var=1.0 + 0.1 * jax.random.uniform(k4, (n,), jnp.float32),
        )

    p["bn_g"] = bn(F_int, 1)
    p["bn_x"] = bn(F_int, 2)
    p["bn_p"] = bn(1, 3)
    return p


def attention_block_forward(g_nchw, x_nchw, params, out_dtype=None):
    """Inputs are consumed in their own dtype (no wrapper-side precast / extra
    HBM pass). bf16 inputs feed the MXU natively; accumulation stays f32."""
    N, F_g, H, W = g_nchw.shape
    _, F_l, _, _ = x_nchw.shape
    F_int = params["wg_conv"].shape[0]

    # Fold eval-mode BN into the 1x1 convs; pre-sum the two projection biases.
    Wg, bg = fold_conv_bn(params["wg_conv"], params["bg_conv"], **params["bn_g"])
    Wx, bx = fold_conv_bn(params["wx_conv"], params["bx_conv"], **params["bn_x"])
    Wp, bp = fold_conv_bn(params["wp_conv"], params["bp_conv"], **params["bn_p"])

    io_dtype = x_nchw.dtype
    Wg = Wg.astype(io_dtype)                           # tiny; match MXU operand dtype
    Wx = Wx.astype(io_dtype)
    bc = (bg + bx).reshape(F_int, 1).astype(jnp.float32)
    wpsi = Wp.reshape(1, F_int).astype(jnp.float32)    # MXU row for psi projection
    bpsi = bp.reshape(1).astype(jnp.float32)           # SMEM scalar

    # NCHW -> (N, C, H*W): pure reshape, no transpose / extra HBM pass.
    g3 = g_nchw.reshape(N, F_g, H * W)
    x3 = x_nchw.reshape(N, F_l, H * W)

    out3 = attention_block_pallas(g3, x3, Wg, Wx, bc, wpsi, bpsi, out_dtype)
    return out3.reshape(N, F_l, H, W)


def attention_block_reference(g_nchw, x_nchw, params):
    """Pure-JAX reference (same folded-BN semantics) for correctness check."""
    Wg, bg = fold_conv_bn(params["wg_conv"], params["bg_conv"], **params["bn_g"])
    Wx, bx = fold_conv_bn(params["wx_conv"], params["bx_conv"], **params["bn_x"])
    Wp, bp = fold_conv_bn(params["wp_conv"], params["bp_conv"], **params["bn_p"])
    g1 = jnp.einsum("oc,nchw->nohw", Wg, g_nchw) + bg[None, :, None, None]
    x1 = jnp.einsum("oc,nchw->nohw", Wx, x_nchw) + bx[None, :, None, None]
    a = jnp.maximum(g1 + x1, 0.0)
    z = jnp.einsum("oc,nchw->nohw", Wp, a) + bp[None, :, None, None]
    return x_nchw * jax.nn.sigmoid(z)


if __name__ == "__main__":
    # Small shapes consistent with the module: F_g = F_l = 4, F_int = 8.
    N, F_g, F_l, F_int, H, W = 2, 4, 4, 8, 16, 16

    key = jax.random.PRNGKey(0)
    kg, kx, kp = jax.random.split(key, 3)
    g = jax.random.normal(kg, (N, F_g, H, W), jnp.float32)
    x = jax.random.normal(kx, (N, F_l, H, W), jnp.float32)
    params = init_params(kp, F_g, F_l, F_int)

    ref = attention_block_reference(g, x, params)

    # f32 I/O path. Tolerance reflects the EUP approximate reciprocal (~1e-4
    # relative) used for the sigmoid gate.
    out = jax.block_until_ready(attention_block_forward(g, x, params))
    assert out.shape == (N, F_l, H, W)
    assert jnp.allclose(out, ref, atol=2e-3, rtol=2e-3), "f32 mismatch vs reference"

    # N == 1 path: exercises the >=2-spatial-tile split (v7x megacore sharding).
    out_n1 = jax.block_until_ready(
        attention_block_forward(g[:1], x[:1], params))
    assert jnp.allclose(out_n1, ref[:1], atol=2e-3, rtol=2e-3), "N=1 mismatch"

    # bf16 path: simulate a producer that already emits bf16 (cast happens
    # outside the wrapper); the kernel feeds bf16 to the MXU, accumulates f32.
    g_bf16 = g.astype(jnp.bfloat16)
    x_bf16 = x.astype(jnp.bfloat16)
    out_bf16 = jax.block_until_ready(
        attention_block_forward(g_bf16, x_bf16, params))
    assert out_bf16.dtype == jnp.bfloat16
    assert jnp.allclose(out_bf16.astype(jnp.float32), ref, atol=5e-2, rtol=5e-2), \
        "bf16 mismatch vs reference"

    print("KERNEL_OK")
</pallas_src>

<mosaic_0001>
module attributes {stable_mosaic.version = 11 : i64} {
  func.func @attention_block_kernel(%arg0: i32, %arg1: i32, %arg2: memref<1x4x256xf32, #tpu.memory_space<vmem>>, %arg3: memref<1x4x256xf32, #tpu.memory_space<vmem>>, %arg4: memref<8x4xf32, #tpu.memory_space<vmem>>, %arg5: memref<8x4xf32, #tpu.memory_space<vmem>>, %arg6: memref<8x1xf32, #tpu.memory_space<vmem>>, %arg7: memref<1x8xf32, #tpu.memory_space<vmem>>, %arg8: memref<1xf32, #tpu.memory_space<smem>>, %arg9: memref<1x4x256xf32, #tpu.memory_space<vmem>>) attributes {dimension_semantics = [#tpu.dimension_semantics<parallel>, #tpu.dimension_semantics<parallel>], iteration_bounds = array<i64: 2, 1>, scalar_prefetch = 0 : i64, scratch_operands = 0 : i64, tpu.core_type = #tpu.core_type<tc>, window_params = [{transform_indices = @transform_0, window_bounds = array<i64: 1, 4, 256>}, {transform_indices = @transform_1, window_bounds = array<i64: 1, 4, 256>}, {pipeline_mode = #tpu.pipeline_mode<synchronous>, transform_indices = @transform_2, window_bounds = array<i64: 8, 4>}, {pipeline_mode = #tpu.pipeline_mode<synchronous>, transform_indices = @transform_3, window_bounds = array<i64: 8, 4>}, {pipeline_mode = #tpu.pipeline_mode<synchronous>, transform_indices = @transform_4, window_bounds = array<i64: 8, 1>}, {pipeline_mode = #tpu.pipeline_mode<synchronous>, transform_indices = @transform_5, window_bounds = array<i64: 1, 8>}, {transform_indices = @transform_6, window_bounds = array<i64: 1>}, {transform_indices = @transform_7, window_bounds = array<i64: 1, 4, 256>}]} {
    %c0 = arith.constant 0 : index
    %c0_0 = arith.constant 0 : index
    %c0_1 = arith.constant 0 : index
    %0 = vector.load %arg2[%c0, %c0_0, %c0_1] : memref<1x4x256xf32, #tpu.memory_space<vmem>>, vector<1x4x256xf32>
    %1 = vector.shape_cast %0 : vector<1x4x256xf32> to vector<4x256xf32>
    %c0_2 = arith.constant 0 : index
    %c0_3 = arith.constant 0 : index
    %c0_4 = arith.constant 0 : index
    %2 = vector.load %arg3[%c0_2, %c0_3, %c0_4] : memref<1x4x256xf32, #tpu.memory_space<vmem>>, vector<1x4x256xf32>
    %3 = vector.shape_cast %2 : vector<1x4x256xf32> to vector<4x256xf32>
    %c0_5 = arith.constant 0 : index
    %c0_6 = arith.constant 0 : index
    %4 = vector.load %arg4[%c0_5, %c0_6] : memref<8x4xf32, #tpu.memory_space<vmem>>, vector<8x4xf32>
    %cst = arith.constant dense<0.000000e+00> : vector<8x256xf32>
    %5 = tpu.matmul %4, %1, %cst {dimension_numbers = #tpu.dot_dimension_numbers<[1], [0], [0], [1], [0, 0, 1, 1], [], []>} : vector<8x4xf32>, vector<4x256xf32>, vector<8x256xf32> -> vector<8x256xf32>
    %c0_7 = arith.constant 0 : index
    %c0_8 = arith.constant 0 : index
    %6 = vector.load %arg5[%c0_7, %c0_8] : memref<8x4xf32, #tpu.memory_space<vmem>>, vector<8x4xf32>
    %cst_9 = arith.constant dense<0.000000e+00> : vector<8x256xf32>
    %7 = tpu.matmul %6, %3, %cst_9 {dimension_numbers = #tpu.dot_dimension_numbers<[1], [0], [0], [1], [0, 0, 1, 1], [], []>} : vector<8x4xf32>, vector<4x256xf32>, vector<8x256xf32> -> vector<8x256xf32>
    %8 = arith.addf %5, %7 : vector<8x256xf32>
    %c0_10 = arith.constant 0 : index
    %c0_11 = arith.constant 0 : index
    %9 = vector.load %arg6[%c0_10, %c0_11] : memref<8x1xf32, #tpu.memory_space<vmem>>, vector<8x1xf32>
    %10 = vector.broadcast %9 : vector<8x1xf32> to vector<8x256xf32>
    %11 = arith.addf %8, %10 : vector<8x256xf32>
    %cst_12 = arith.constant 0.000000e+00 : f32
    %12 = vector.broadcast %cst_12 : f32 to vector<8x256xf32>
    %13 = arith.maximumf %11, %12 : vector<8x256xf32>
    %c0_13 = arith.constant 0 : index
    %c0_14 = arith.constant 0 : index
    %14 = vector.load %arg7[%c0_13, %c0_14] : memref<1x8xf32, #tpu.memory_space<vmem>>, vector<1x8xf32>
    %cst_15 = arith.constant dense<0.000000e+00> : vector<1x256xf32>
    %15 = tpu.matmul %14, %13, %cst_15 {dimension_numbers = #tpu.dot_dimension_numbers<[1], [0], [0], [1], [0, 0, 1, 1], [], []>} : vector<1x8xf32>, vector<8x256xf32>, vector<1x256xf32> -> vector<1x256xf32>
    %c0_16 = arith.constant 0 : index
    %16 = memref.load %arg8[%c0_16] : memref<1xf32, #tpu.memory_space<smem>>
    %17 = vector.broadcast %16 : f32 to vector<1x256xf32>
    %18 = arith.addf %15, %17 : vector<1x256xf32>
    %cst_17 = arith.constant 0.000000e+00 : f32
    %19 = vector.broadcast %cst_17 : f32 to vector<1x256xf32>
    %20 = arith.subf %19, %18 : vector<1x256xf32>
    %21 = math.exp %20 : vector<1x256xf32>
    %cst_18 = arith.constant 1.000000e+00 : f32
    %22 = vector.broadcast %cst_18 : f32 to vector<1x256xf32>
    %23 = arith.addf %22, %21 : vector<1x256xf32>
    %24 = tpu.reciprocal %23 {approx = true} : vector<1x256xf32> -> vector<1x256xf32>
    %25 = vector.broadcast %24 : vector<1x256xf32> to vector<4x256xf32>
    %26 = arith.mulf %3, %25 : vector<4x256xf32>
    %c0_19 = arith.constant 0 : index
    %c0_20 = arith.constant 0 : index
    %c0_21 = arith.constant 0 : index
    %27 = vector.load %arg9[%c0_19, %c0_20, %c0_21] : memref<1x4x256xf32, #tpu.memory_space<vmem>>, vector<1x4x256xf32>
    %28 = vector.shape_cast %27 : vector<1x4x256xf32> to vector<4x256xf32>
    %29 = vector.shape_cast %26 : vector<4x256xf32> to vector<1x4x256xf32>
    tpu.vector_store %arg9[%c0_19, %c0_20, %c0_21], %29 {strides = array<i32>} : memref<1x4x256xf32, #tpu.memory_space<vmem>>, vector<1x4x256xf32>,
    return
  }
  func.func @transform_0(%arg0: i32, %arg1: i32) -> (i32, i32, i32) {
    %c0_i32 = arith.constant 0 : i32
    %c0_i32_0 = arith.constant 0 : i32
    return %arg0, %c0_i32, %arg1 : i32, i32, i32
  }
  func.func @transform_1(%arg0: i32, %arg1: i32) -> (i32, i32, i32) {
    %c0_i32 = arith.constant 0 : i32
    %c0_i32_0 = arith.constant 0 : i32
    return %arg0, %c0_i32, %arg1 : i32, i32, i32
  }
  func.func @transform_2(%arg0: i32, %arg1: i32) -> (i32, i32) {
    %c0_i32 = arith.constant 0 : i32
    %c0_i32_0 = arith.constant 0 : i32
    %c0_i32_1 = arith.constant 0 : i32
    return %c0_i32, %c0_i32_0 : i32, i32
  }
  func.func @transform_3(%arg0: i32, %arg1: i32) -> (i32, i32) {
    %c0_i32 = arith.constant 0 : i32
    %c0_i32_0 = arith.constant 0 : i32
    %c0_i32_1 = arith.constant 0 : i32
    return %c0_i32, %c0_i32_0 : i32, i32
  }
  func.func @transform_4(%arg0: i32, %arg1: i32) -> (i32, i32) {
    %c0_i32 = arith.constant 0 : i32
    %c0_i32_0 = arith.constant 0 : i32
    %c0_i32_1 = arith.constant 0 : i32
    return %c0_i32, %c0_i32_0 : i32, i32
  }
  func.func @transform_5(%arg0: i32, %arg1: i32) -> (i32, i32) {
    %c0_i32 = arith.constant 0 : i32
    %c0_i32_0 = arith.constant 0 : i32
    %c0_i32_1 = arith.constant 0 : i32
    return %c0_i32, %c0_i32_0 : i32, i32
  }
  func.func @transform_6(%arg0: i32, %arg1: i32) -> i32 {
    %c0_i32 = arith.constant 0 : i32
    %c0_i32_0 = arith.constant 0 : i32
    return %c0_i32 : i32
  }
  func.func @transform_7(%arg0: i32, %arg1: i32) -> (i32, i32, i32) {
    %c0_i32 = arith.constant 0 : i32
    %c0_i32_0 = arith.constant 0 : i32
    return %arg0, %c0_i32, %arg1 : i32, i32, i32
  }
}

</mosaic_0001>

<bundles_post_ra>
// kernel: tpu_custom_call.1
= control target key start
LH: loop header
LB: loop body
LE: loop exit
PB: predicated region body
PF: predicated region fallthrough
CT: control target
= control target key end

     0   :  { %s1065_s0 = inlined_call_operand.vmem [shape: f32[2,4,256], index: 0, kind: input, shape index: {}]   ;;  %s1066_s1 = inlined_call_operand.vmem [shape: f32[2,4,256], index: 1, kind: input, shape index: {}]   ;;  %s1067_s2 = inlined_call_operand.vmem [shape: f32[8,4], index: 2, kind: input, shape index: {}]   ;;  %s1068_s3 = inlined_call_operand.vmem [shape: f32[8,4], index: 3, kind: input, shape index: {}]   ;;  %s1069_s4 = inlined_call_operand.vmem [shape: f32[8,1], index: 4, kind: input, shape index: {}]   ;;  %s1070_s5 = inlined_call_operand.vmem [shape: f32[1,8], index: 5, kind: input, shape index: {}]   ;;  %s1071_s6 = inlined_call_operand.<no memory space> [shape: f32[1], index: 6, kind: input, shape index: {}]   ;;  %s1072_s7 = inlined_call_operand.hbm [shape: f32[2,4,256], index: 7, kind: output, shape index: {}]  }
   0x1   :  { %12 = sst [smem:[#allocation2]] %s1071_s6 }
   0x2   :  { %13 = vsyncpa [#allocation4], 0 }
   0x3   :  { %15 = vsyncpa [#allocation4 + $0x1], 0  ;;  %s951_s26 = smov 0   ;;  %s953_s27 = smov 0  }
   0x4   :  { %s955_s28 = smov 0   ;;  %s957_s29 = smov 0  }
   0x5   :  { %s959_s30 = smov 0   ;;  %s961_s8 = smov 0  }
   0x6 LB: > { %s734_s6 = sadd.s32 4294967295, %s903_s8   ;;  %s735_s9 = sadd.s32 4294967294, %s903_s8   ;;  %s903_s8 = sphi %s961_s8, %s21_s8   ;;  %s899_s30 = sphi %s959_s30, %s1079_s30   ;;  %s895_s29 = sphi %s957_s29, %s1078_s29   ;;  %s891_s28 = sphi %s955_s28, %s1077_s28   ;;  %s887_s27 = sphi %s953_s27, %s1076_s27   ;;  %s883_s26 = sphi %s951_s26, %s1075_s26  }
   0x7   : > { %s33_s10 = sadd.s32 1, %s899_s30  ;;  %s203_s11 = sadd.s32 1, %s891_s28 }
   0x8   : > { %p35_p0 = scmp.ge.s32.totalorder %s33_s10, 2  ;;  %p213_p1 = scmp.ne.s32.totalorder %s891_s28, %s887_s27 }
   0x9   : > { %p214_p2 = scmp.eq.s32.totalorder %s734_s6, 1  ;;  %p219_p3 = scmp.ne.s32.totalorder %s887_s27, %s883_s26 }
   0xa   : > { %s1081_s10 = smov (%p35_p0, %s33_s10), 0  ;;  %p220_p5 = scmp.eq.s32.totalorder %s735_s9, 1 }
   0xb   : > { %p991_p4 = por %p214_p2, %p213_p1  ;;  %s198_s13 = ssub.s32 %s899_s30, %s1081_s10 }
   0xc   : > { %p738_p6 = scmp.ge.s32.totalorder %s903_s8, 1  ;;  %p201_p7 = scmp.eq.s32.totalorder %s198_s13, 0 }
   0xd   : > { %p998_p8 = por %p220_p5, %p219_p3  ;;  %p279_p9 = scmp.lt.s32.totalorder %s903_s8, 3 }
   0xe   : > { %s1004_s15 = scalar_select %p201_p7, %s891_s28, %s203_s11  }
   0xf   : > { %p280_p10 = pnand %p738_p6, %p279_p9 }
  0x10   : > { %p325_p11 = scmp.lt.s32.totalorder (!%p280_p10), %s895_s29, 1  ;;  %s758_s21 = sshll.u32 (!%p280_p10), %s895_s29, 7 }
  0x11   : > { %283 = sbr.rel (%p280_p10) target bundleno = 485 (0x1e5), region = 48  ;;  %s638_s6 = scalar_lea.hbm (!%p280_p10), %s1072_s7, %s758_s21 }
  0x12   : > { %s907_s13 = smov (!%p280_p10), [#allocation3]  }
  0x13   : > { %s831_s16 = sshll.u32 (!%p280_p10), %s907_s13, 4  ;;  %s832_s16 = int_to_ptr.vmem [resolvable:$false] %s831_s16 }
  0x16   : > { %v905_v0 = vmov 0.0   ;;  %v511_v1 = vld [vmem:[%s1069_s4] sm:$0xff]  ;;  %s326_s18 = scalar_select %p325_p11, %s895_s29, 1  ;;  %v906_v2 = vmov 0   ;;  %vm355_vm0 = vcmask 1043456   ;;  %vm351_vm1 = vcmask 31744  }
  0x17   : > { %424 = vmatprep.mubr.f32.mxu0 %v905_v0  ;;  %504 = vmatprep.mubr.f32.mxu1 %v905_v0  ;;  %v348_v7 = vld [vmem:[%s1068_s3] sm:$0xff]  ;;  %vm524_vm2 = vcmask 64512   ;;  %v609_v34 = vlaneseq  ;;  %s833_s29 = scalar_lea.vmem %s832_s16, 256 }
  0x18   : > { %816 = vset.pattern.permute.xlu0 %v906_v2  ;;  %s756_s19 = sshll.u32 %s326_s18, 3  ;;  %v347_v8 = vld [vmem:[%s1067_s2] sm:$0xff]  ;;  %s522_s18 = sld [smem:[#allocation2]] }
  0x19   : > { %514 = vperm.xlu0 %816, %v511_v1   ;;  %s342_s22 = scalar_lea.vmem %s1066_s1, %s756_s19  ;;  %s332_s25 = scalar_lea.vmem %s1065_s0, %s756_s19  ;;  %v521_v20 = vld [vmem:[%s1070_s5] sm:$0x1]  ;;  %v610_v35 = vshrl.u32 %v609_v34, 7 }
  0x1a   : > { %v346_v3 = vld [vmem:[%s342_s22] sm:$0xff]  ;;  %s321_s19 = sand.u32 1, %s887_s27  }
  0x1b   : > { %v345_v4 = vld [vmem:[%s332_s25] sm:$0xff]  ;;  %v350_v5 = vcombine.high %v346_v3, %v346_v3  ;;  %s739_s20 = sshll.u32 %s321_s19, 3  ;;  %v611_v36 = vsub.s32 0, %v610_v35  ;;  %s624_s9 = scalar_lea.sflag [#allocation4], %s321_s19 }
  0x1c   : > { %v432_v6 = vcombine.high %v345_v4, %v345_v4  ;;  %s323_s22 = scalar_lea.vmem [#allocation3], %s739_s20 }
  0x1d   : > { %744 = vmatprep.subr.msk.mxu0 %vm355_vm0, %v350_v5  ;;  %s640_s23 = sshll.u32 %s323_s22, 4  ;;  %s641_s23 = int_to_ptr.vmem [resolvable:$true] %s640_s23 }
  0x1e   : > { %747 = vmatprep.subr.msk.mxu1 %vm355_vm0, %v432_v6  ;;  %745 = vmatpush1.msk.msra.mxu0 %vm355_vm0, %v346_v3  ;;  %v523_v21 = vstv %s522_s18  ;;  %s827_s11 = scalar_lea.vmem %s641_s23, 128  ;;  %p834_p1 = scmp.lt.s32.totalorder %s641_s23, %s832_s16 }
  0x1f   : > { %748 = vmatpush1.msk.msra.mxu1 %vm355_vm0, %v345_v4  ;;  %746 = vmatmul.mubr.msk.f32.vlgmr.msra.gmra.mxu0 %vm351_vm1, %v348_v7  ;;  %p828_p12 = scmp.ne.s32.totalorder %s641_s23, %s827_s11  ;;  %p835_p2 = scmp.lt.s32.totalorder %s833_s29, %s827_s11 }
  0x20   : > { %749 = vmatmul.mubr.msk.f32.vlgmr.msra.gmra.mxu1 %vm351_vm1, %v347_v8  ;;  %592 = vmatprep.mubr.f32.mxu0 %v905_v0 }
  0x21   : > { %p829_p13 = pnand %p828_p12, %p991_p4  ;;  %p836_p3 = por %p835_p2, %p834_p1 }
  0x23   : > { %p830_p0 = pneg %p829_p13 }
  0x25   : > { %p837_p5 = pnand %p836_p3, %p830_p0 }
  0x94   : > { %v515_v12 = vpop.permute.xlu0 %514 }
  0xdf   : > { %v426_v9 = vpop.f32.mrf.mxu0 }
  0xe0   : > { %v506_v10 = vpop.f32.mrf.mxu1 }
  0xe1   : > { %v507_v11 = vadd.f32 %v506_v10, %v426_v9  ;;  %v428_v13 = vpop.f32.mrf.mxu0 }
  0xe2   : > { %v508_v14 = vpop.f32.mrf.mxu1 }
  0xe3   : > { %v509_v15 = vadd.f32 %v508_v14, %v428_v13  ;;  %v517_v16 = vadd.f32 %v515_v12, %v507_v11 }
  0xe5   : > { %v518_v17 = vadd.f32 %v515_v12, %v509_v15  ;;  %v519_v19 = vmax.f32 %v517_v16, 0.0 }
  0xe7   : > { %v520_v18 = vmax.f32 %v518_v17, 0.0 }
  0xe9   : > { %558 = vmatprep.subr.mxu0 %v520_v18 }
  0xea   : > { %559 = vmatpush1.msra.mxu0 %v519_v19 }
  0xeb   : > { %750 = vmatmul.mubr.msk.f32.vlgmr.msra.gmra.mxu0 %vm524_vm2, %v521_v20 }
 0x1ab   : > { %v594_v22 = vpop.f32.mrf.mxu0 }
 0x1ac   : > { %v595_v23 = vadd.f32 %v594_v22, %v523_v21 }
 0x1ad   : > { %v596_v24 = vpop.f32.mrf.mxu0 }
 0x1ae   : > { %v599_v25 = vsub.f32 0.0, %v595_v23  ;;  %v597_v26 = vadd.f32 %v596_v24, %v523_v21 }
 0x1b0   : > { %v601_v27 = vmul.f32 1.442695, %v599_v25  ;;  %v600_v28 = vsub.f32 0.0, %v597_v26 }
 0x1b2   : > { %819 = vpow2.f32 %v601_v27  ;;  %v603_v29 = vmul.f32 1.442695, %v600_v28 }
 0x1b4   : > { %821 = vpow2.f32 %v603_v29 }
 0x1bf   : > { %v820_v30 = vpop.eup %819 }
 0x1c0   : > { %v605_v31 = vadd.f32 1.0, %v820_v30 }
 0x1c1   : > { %v822_v32 = vpop.eup %821 }
 0x1c2   : > { %823 = vrcp.f32 %v605_v31  ;;  %v606_v33 = vadd.f32 1.0, %v822_v32 }
 0x1c4   : > { %825 = vrcp.f32 %v606_v33 }
 0x1cf   : > { %v824_v37 = vpop.eup %823 }
 0x1d0   : > { %v612_v39 = vrot.slane %v824_v37, %v611_v36 }
 0x1d1   : > { %v826_v38 = vpop.eup %825 }
 0x1d2   : > { %v616_v40 = vrot.slane %v826_v38, %v611_v36 }
 0x1d4   : > { %v619_v41 = vcombine.low %v612_v39, %v616_v40 }
 0x1d6   : > { %v621_v42 = vmul.f32 %v619_v41, %v346_v3 }
 0x1d8   : > { %622 = vst [vmem:[%s323_s22] sm:$0xff] %v621_v42 }
 0x1d9   : > { %840 = shalt.err (!%p837_p5)
}
 0x1da   : > { %s841_s17 = scalar_lea.hbm %s638_s6, 128  ;;  %s845_s20 = scalar_lea.hbm %s1072_s7, 256 }
 0x1db   : > { %p842_p6 = scmp.ne.s32.totalorder %s638_s6, %s841_s17  ;;  %p846_p10 = scmp.lt.s32.totalorder %s638_s6, %s1072_s7 }
 0x1dc   : > { %p847_p11 = scmp.lt.s32.totalorder %s845_s20, %s841_s17 }
 0x1dd   : > { %p843_p7 = pnand %p842_p6, %p991_p4 }
 0x1de   : > { %p848_p12 = por %p847_p11, %p846_p10 }
 0x1df   : > { %p844_p9 = pneg %p843_p7 }
 0x1e1   : > { %p849_p13 = pnand %p848_p12, %p844_p9 }
 0x1e3   : > { %852 = shalt.err (!%p849_p13)
}
 0x1e4   : > { %759 = dma.vmem_to_hbm [thread:$0]  (%p991_p4), %s641_s23, 128, %s638_s6, %s624_s9  }
 0x1e5 PF: > { %p765_p0 = scmp.ge.s32.totalorder %s903_s8, 2  ;;  %s652_s24 = sand.u32 1, %s883_s26  }
 0x1e6   : > { %s653_s25 = scalar_lea.sflag [#allocation4], %s652_s24 }
 0x1e7   : > { %p762_p1 = pnand %p765_p0, %p998_p8 }
 0x1e9   : > { %p763_p2 = pneg %p762_p1 }
 0x1eb   : > { %878 = dma.done.wait (%p763_p2), %s653_s25, 128  }
 0x1ec   : > { %880 = vsyncadd (%p763_p2), %s653_s25, 4294967168  ;;  %s21_s8 = sadd.s32 1, %s903_s8   ;;  %s1075_s26 = smov %s887_s27 }
 0x1ed   : > { %p18_p3 = scmp.ge.s32.totalorder %s21_s8, 4   ;;  %s1076_s27 = smov %s891_s28 }
 0x1ee   : > { %s1077_s28 = smov %s1004_s15  ;;  %s1078_s29 = smov %s899_s30 }
 0x1ef   : > { %s1079_s30 = smov %s1081_s10  ;;  %20 = sbr.rel (!%p18_p3) target bundleno = 6 (0x6), region = 86 }
 0x1f4   :  { %658 = vsyncpa [#allocation4], 1 }
 0x1f5   :  { %660 = vsyncpa [#allocation4 + $0x1], 1 }

</bundles_post_ra>
